<compile_context>
chip_gen: v7x
topology: tpu7x:2x2x1
jax: 0.10.0
libtpu: 0.0.40
codegen_flags: <defaults>
</compile_context>

<pallas_src>
import functools
import math

import jax
import jax.numpy as jnp
from jax.experimental import pallas as pl
from jax.experimental.pallas import tpu as pltpu


# ---------------------------------------------------------------------------
# Fused kernel: one grid step == one block of Bt images, everything in VMEM.
# ---------------------------------------------------------------------------
def _pyramid_kernel(x_ref, scale_ref,
                    wf_ref, bf_ref,          # frontend (block-diag over 2*H pixel slots)
                    wv_ref, bv_ref,          # v_transformer  [H*C_f, Z*C_bev]
                    wh_ref, bh_ref,          # h_transformer  [W*C_f, Z*C_bev]
                    wt_ref, bt_ref,          # shared topdown (Z-block-diag)
                    wc_ref, bc_ref,          # classifier (v/h halves vstacked)
                    out_ref):
    m = x_ref.shape[0]                       # Bt * X rows in this grid step
    kv = wv_ref.shape[0]                     # H * C_f : lane split of frontend output

    # ---- frontend: one lane-dense block-diagonal 1x1 conv + ReLU
    feats = jnp.maximum(
        jnp.dot(x_ref[...], wf_ref[...], preferred_element_type=jnp.float32)
        + bf_ref[...], 0.0)                                   # [m, 2*H*C_f] f32
    fv = feats[:, :kv].astype(jnp.bfloat16)                   # per-column feats (v path)
    fh = feats[:, kv:].astype(jnp.bfloat16)                   # per-row feats    (h path)

    scale = scale_ref[...]                                    # [m, 1] f32 calib scale

    # ---- v / h transformers: single K = H*C_f matmuls, f32 epilogue
    v_bev = jnp.maximum(
        (jnp.dot(fv, wv_ref[...], preferred_element_type=jnp.float32)
         + bv_ref[...]) * scale, 0.0)                         # [m, Z*C_bev]
    h_bev = jnp.maximum(
        (jnp.dot(fh, wh_ref[...], preferred_element_type=jnp.float32)
         + bh_ref[...]) * scale, 0.0)                         # [m, Z*C_bev]

    # ---- shared topdown: stack both branches along M -> one [2m, Z*C_bev] dot
    bev = jnp.concatenate([v_bev, h_bev], axis=0).astype(jnp.bfloat16)
    td = jnp.maximum(
        jnp.dot(bev, wt_ref[...], preferred_element_type=jnp.float32)
        + bt_ref[...], 0.0)                                   # [2m, Z*C_td]

    # ---- classifier on channel-concat([v_td, h_td]): one K = 2*Z*C_td dot
    vh_td = jnp.concatenate([td[:m, :], td[m:, :]], axis=-1).astype(jnp.bfloat16)
    out_ref[...] = (jnp.dot(vh_td, wc_ref[...], preferred_element_type=jnp.float32)
                    + bc_ref[...])                            # [m, Z*n_cls_pad] f32


# ---------------------------------------------------------------------------
# Deterministic parameter init (synthetic; no checkpoint loading)
# ---------------------------------------------------------------------------
def init_params(key, *, c_in, c_f, h, w, z, c_bev, c_td, n_classes):
    ks = jax.random.split(key, 5)

    def lin(k, fan_in, fan_out):
        kw, kb = jax.random.split(k)
        lim = 1.0 / jnp.sqrt(jnp.float32(fan_in))
        Wm = jax.random.uniform(kw, (fan_in, fan_out), jnp.float32, -lim, lim)
        Bv = jax.random.uniform(kb, (fan_out,), jnp.float32, -lim, lim)
        return Wm, Bv

    return {
        "frontend":      lin(ks[0], c_in, c_f),
        "v_transformer": lin(ks[1], h * c_f, z * c_bev),
        "h_transformer": lin(ks[2], w * c_f, z * c_bev),
        # NOTE: the reference forward uses `self.topdown` for BOTH branches.
        "topdown":       lin(ks[3], c_bev, c_td),
        "classifier":    lin(ks[4], 2 * c_td, n_classes),
    }


def _choose_block_b(batch, target=8):
    """Largest divisor of `batch` <= target that still leaves >= 2 grid steps
    (so both v7x TensorCores get work); falls back to 1."""
    best = 1
    for cand in range(1, batch + 1):
        if batch % cand:
            continue
        if cand > target:
            break
        if batch // cand >= 2 or batch == 1:
            best = cand
    return best


# ---------------------------------------------------------------------------
# Forward pass (mirrors HorizontallyAwarePyramidOccupancyNetworkV2.forward)
# ---------------------------------------------------------------------------
def forward(params, image, calib, *, z, c_bev, block_b=None):
    B, C_in, H, W = image.shape
    # torch.cat([v_td, h_td], dim=1) is only shape-valid when the two BEV grids
    # match, i.e. H == W (same as the PyTorch reference semantics).
    assert H == W, "channel concat of v/h topdown features requires H == W"
    X = W

    Wf, bf = params["frontend"]
    Wv, bv = params["v_transformer"]
    Wh, bh = params["h_transformer"]
    Wt, bt = params["topdown"]
    Wc, bc = params["classifier"]

    C_f = Wf.shape[1]
    n_bev = Wv.shape[1]
    assert n_bev == z * c_bev, (n_bev, z, c_bev)
    assert Wv.shape[0] == H * C_f and Wh.shape[0] == W * C_f
    C_td = Wt.shape[1]
    n_classes = Wc.shape[1]
    assert Wc.shape[0] == 2 * C_td

    # pad n_classes so the flat logits slab width (z * n_cls_pad) is a multiple
    # of 128 -> unmasked, full-lane vector stores.
    step = 128 // math.gcd(z, 128)
    n_cls_pad = ((n_classes + step - 1) // step) * step

    if block_b is None:
        block_b = _choose_block_b(B)
    assert B % block_b == 0
    n_steps = B // block_b
    Mt = block_b * X

    bf16 = jnp.bfloat16

    # ---- packed per-image slab: [v-pack | h-pack] along lanes -------------
    #   v-pack: row i = image column w=i, lanes h*C_in + c
    #   h-pack: row i = image row    h=i, lanes w*C_in + c
    x_v = jnp.transpose(image, (0, 3, 2, 1)).reshape(B, X, H * C_in)
    x_h = jnp.transpose(image, (0, 2, 3, 1)).reshape(B, X, W * C_in)
    x_all = jnp.concatenate([x_v, x_h], axis=-1).reshape(B * X, 2 * H * C_in).astype(bf16)

    # per-row calib scale column (synthetic use of focal length fx)
    cscale = (calib[:, 0, 0] / 100.0).astype(jnp.float32)                    # [B]
    scale_col = jnp.broadcast_to(cscale[:, None], (B, X)).reshape(B * X, 1)  # [B*X, 1]

    # ---- weight prep: bf16 MXU operands, block-diagonal forms --------------
    eye2h = jnp.eye(2 * H, dtype=jnp.float32)
    eye_z = jnp.eye(z, dtype=jnp.float32)

    wf_blk = jnp.kron(eye2h, Wf).astype(bf16)                  # [2H*C_in, 2H*C_f]
    bf_t = jnp.tile(bf, 2 * H).reshape(1, 2 * H * C_f).astype(jnp.float32)

    wv_b = Wv.astype(bf16)                                     # [H*C_f, Z*C_bev]
    wh_b = Wh.astype(bf16)                                     # [W*C_f, Z*C_bev]
    bv_t = bv.reshape(1, n_bev).astype(jnp.float32)
    bh_t = bh.reshape(1, n_bev).astype(jnp.float32)

    wt_blk = jnp.kron(eye_z, Wt).astype(bf16)                  # [Z*C_bev, Z*C_td]
    bt_t = jnp.tile(bt, z).reshape(1, z * C_td).astype(jnp.float32)

    Wc_pad = jnp.pad(Wc, ((0, 0), (0, n_cls_pad - n_classes)))
    bc_pad = jnp.pad(bc, (0, n_cls_pad - n_classes))
    wc_stk = jnp.concatenate(
        [jnp.kron(eye_z, Wc_pad[:C_td]), jnp.kron(eye_z, Wc_pad[C_td:])],
        axis=0).astype(bf16)                                   # [2*Z*C_td, Z*n_cls_pad]
    bc_t = jnp.tile(bc_pad, z).reshape(1, z * n_cls_pad).astype(jnp.float32)

    out = pl.pallas_call(
        _pyramid_kernel,
        out_shape=jax.ShapeDtypeStruct((B * X, z * n_cls_pad), jnp.float32),
        grid=(n_steps,),
        in_specs=[
            pl.BlockSpec((Mt, 2 * H * C_in), lambda i: (i, 0)),           # packed image
            pl.BlockSpec((Mt, 1), lambda i: (i, 0)),                      # calib scale col
            pl.BlockSpec((2 * H * C_in, 2 * H * C_f), lambda i: (0, 0)),  # Wf block-diag
            pl.BlockSpec((1, 2 * H * C_f), lambda i: (0, 0)),             # bf tiled
            pl.BlockSpec((H * C_f, n_bev), lambda i: (0, 0)),             # Wv
            pl.BlockSpec((1, n_bev), lambda i: (0, 0)),                   # bv
            pl.BlockSpec((W * C_f, n_bev), lambda i: (0, 0)),             # Wh
            pl.BlockSpec((1, n_bev), lambda i: (0, 0)),                   # bh
            pl.BlockSpec((n_bev, z * C_td), lambda i: (0, 0)),            # Wt block-diag
            pl.BlockSpec((1, z * C_td), lambda i: (0, 0)),                # bt tiled
            pl.BlockSpec((2 * z * C_td, z * n_cls_pad), lambda i: (0, 0)),  # Wc stacked
            pl.BlockSpec((1, z * n_cls_pad), lambda i: (0, 0)),           # bc tiled
        ],
        out_specs=pl.BlockSpec((Mt, z * n_cls_pad), lambda i: (i, 0)),
        compiler_params=pltpu.CompilerParams(
            dimension_semantics=("parallel",)),
    )(x_all, scale_col, wf_blk, bf_t, wv_b, bv_t, wh_b, bh_t,
      wt_blk, bt_t, wc_stk, bc_t)

    # out[b*X + x, z*n_cls_pad + k] == logits[b, k, z, x]  ->  NCHW
    logits = out.reshape(B, X, z, n_cls_pad)[..., :n_classes]
    return jnp.transpose(logits, (0, 3, 2, 1))                 # [B, n_classes, Z, X]


# ---------------------------------------------------------------------------
# Pure-JAX f32 reference (same synthetic semantics) for tolerance checking.
# ---------------------------------------------------------------------------
def reference_forward(params, image, calib, *, z, c_bev):
    B, C_in, H, W = image.shape
    Wf, bf = params["frontend"]
    Wv, bv = params["v_transformer"]
    Wh, bh = params["h_transformer"]
    Wt, bt = params["topdown"]
    Wc, bc = params["classifier"]
    C_f = Wf.shape[1]

    scale = (calib[:, 0, 0] / 100.0)[:, None, None]                         # [B,1,1]
    feats = jax.nn.relu(jnp.einsum('bchw,cf->bhwf', image, Wf) + bf)        # [B,H,W,C_f]

    fv = jnp.transpose(feats, (0, 2, 1, 3)).reshape(B, W, H * C_f)
    v_bev = jax.nn.relu((fv @ Wv + bv) * scale)                             # [B,W,Z*C_bev]
    fh = feats.reshape(B, H, W * C_f)
    h_bev = jax.nn.relu((fh @ Wh + bh) * scale)                             # [B,H,Z*C_bev]

    def topdown(xarr):
        xz = xarr.reshape(B, -1, z, c_bev)
        return jax.nn.relu(jnp.einsum('bxzc,cd->bxzd', xz, Wt) + bt)

    v_td = topdown(v_bev)
    h_td = topdown(h_bev)
    cat = jnp.concatenate([v_td, h_td], axis=-1)                            # [B,X,Z,2*C_td]
    logits = jnp.einsum('bxzc,ck->bxzk', cat, Wc) + bc                      # [B,X,Z,n_cls]
    return jnp.transpose(logits, (0, 3, 2, 1))                              # [B,n_cls,Z,X]


# ---------------------------------------------------------------------------
if __name__ == "__main__":
    B, C_in, H, W = 2, 4, 16, 16
    C_f, Z, C_bev, C_td, n_classes = 8, 16, 8, 8, 4

    key = jax.random.PRNGKey(0)
    k_img, k_cal, k_par = jax.random.split(key, 3)

    image = jax.random.normal(k_img, (B, C_in, H, W), jnp.float32)

    # synthetic camera intrinsics [B, 3, 3]
    focal = 100.0 + 10.0 * jax.random.uniform(k_cal, (B,), jnp.float32)
    calib = jnp.tile(jnp.eye(3, dtype=jnp.float32), (B, 1, 1))
    calib = (calib.at[:, 0, 0].set(focal)
                  .at[:, 1, 1].set(focal)
                  .at[:, 0, 2].set(W / 2.0)
                  .at[:, 1, 2].set(H / 2.0))

    params = init_params(k_par, c_in=C_in, c_f=C_f, h=H, w=W, z=Z,
                         c_bev=C_bev, c_td=C_td, n_classes=n_classes)

    fwd = jax.jit(functools.partial(forward, z=Z, c_bev=C_bev))
    logits = fwd(params, image, calib)
    jax.block_until_ready(logits)

    assert logits.shape == (B, n_classes, Z, W), logits.shape
    assert logits.dtype == jnp.float32
    assert bool(jnp.all(jnp.isfinite(logits)))

    # tolerance-asserted pure-JAX reference (bf16 MXU operands -> ~1e-3 error)
    ref = reference_forward(params, image, calib, z=Z, c_bev=C_bev)
    max_err = float(jnp.max(jnp.abs(logits - ref)))
    assert max_err < 5e-2, f"max abs error vs f32 reference: {max_err}"

    print("KERNEL_OK")
</pallas_src>

<mosaic_0001>
module attributes {stable_mosaic.version = 11 : i64} {
  func.func @_pyramid_kernel(%arg0: i32, %arg1: memref<16x128xbf16, #tpu.memory_space<vmem>>, %arg2: memref<16x1xf32, #tpu.memory_space<vmem>>, %arg3: memref<128x256xbf16, #tpu.memory_space<vmem>>, %arg4: memref<1x256xf32, #tpu.memory_space<vmem>>, %arg5: memref<128x128xbf16, #tpu.memory_space<vmem>>, %arg6: memref<1x128xf32, #tpu.memory_space<vmem>>, %arg7: memref<128x128xbf16, #tpu.memory_space<vmem>>, %arg8: memref<1x128xf32, #tpu.memory_space<vmem>>, %arg9: memref<128x128xbf16, #tpu.memory_space<vmem>>, %arg10: memref<1x128xf32, #tpu.memory_space<vmem>>, %arg11: memref<256x128xbf16, #tpu.memory_space<vmem>>, %arg12: memref<1x128xf32, #tpu.memory_space<vmem>>, %arg13: memref<16x128xf32, #tpu.memory_space<vmem>>) attributes {dimension_semantics = [#tpu.dimension_semantics<parallel>], iteration_bounds = array<i64: 2>, scalar_prefetch = 0 : i64, scratch_operands = 0 : i64, tpu.core_type = #tpu.core_type<tc>, window_params = [{transform_indices = @transform_0, window_bounds = array<i64: 16, 128>}, {transform_indices = @transform_1, window_bounds = array<i64: 16, 1>}, {pipeline_mode = #tpu.pipeline_mode<synchronous>, transform_indices = @transform_2, window_bounds = array<i64: 128, 256>}, {pipeline_mode = #tpu.pipeline_mode<synchronous>, transform_indices = @transform_3, window_bounds = array<i64: 1, 256>}, {pipeline_mode = #tpu.pipeline_mode<synchronous>, transform_indices = @transform_4, window_bounds = array<i64: 128, 128>}, {pipeline_mode = #tpu.pipeline_mode<synchronous>, transform_indices = @transform_5, window_bounds = array<i64: 1, 128>}, {pipeline_mode = #tpu.pipeline_mode<synchronous>, transform_indices = @transform_6, window_bounds = array<i64: 128, 128>}, {pipeline_mode = #tpu.pipeline_mode<synchronous>, transform_indices = @transform_7, window_bounds = array<i64: 1, 128>}, {pipeline_mode = #tpu.pipeline_mode<synchronous>, transform_indices = @transform_8, window_bounds = array<i64: 128, 128>}, {pipeline_mode = #tpu.pipeline_mode<synchronous>, transform_indices = @transform_9, window_bounds = array<i64: 1, 128>}, {pipeline_mode = #tpu.pipeline_mode<synchronous>, transform_indices = @transform_10, window_bounds = array<i64: 256, 128>}, {pipeline_mode = #tpu.pipeline_mode<synchronous>, transform_indices = @transform_11, window_bounds = array<i64: 1, 128>}, {transform_indices = @transform_12, window_bounds = array<i64: 16, 128>}]} {
    %c0 = arith.constant 0 : index
    %c0_0 = arith.constant 0 : index
    %0 = vector.load %arg1[%c0, %c0_0] : memref<16x128xbf16, #tpu.memory_space<vmem>>, vector<16x128xbf16>
    %c0_1 = arith.constant 0 : index
    %c0_2 = arith.constant 0 : index
    %1 = vector.load %arg3[%c0_1, %c0_2] : memref<128x256xbf16, #tpu.memory_space<vmem>>, vector<128x256xbf16>
    %cst = arith.constant dense<0.000000e+00> : vector<16x256xf32>
    %2 = tpu.matmul %0, %1, %cst {dimension_numbers = #tpu.dot_dimension_numbers<[1], [0], [0], [1], [0, 0, 1, 1], [], []>} : vector<16x128xbf16>, vector<128x256xbf16>, vector<16x256xf32> -> vector<16x256xf32>
    %c0_3 = arith.constant 0 : index
    %c0_4 = arith.constant 0 : index
    %3 = vector.load %arg4[%c0_3, %c0_4] : memref<1x256xf32, #tpu.memory_space<vmem>>, vector<1x256xf32>
    %4 = vector.broadcast %3 : vector<1x256xf32> to vector<16x256xf32>
    %5 = arith.addf %2, %4 : vector<16x256xf32>
    %cst_5 = arith.constant 0.000000e+00 : f32
    %6 = vector.broadcast %cst_5 : f32 to vector<16x256xf32>
    %7 = arith.maximumf %5, %6 : vector<16x256xf32>
    %8 = vector.extract_strided_slice %7 {offsets = [0, 0], sizes = [16, 128], strides = [1, 1]} : vector<16x256xf32> to vector<16x128xf32>
    %9 = arith.truncf %8 : vector<16x128xf32> to vector<16x128xbf16>
    %10 = vector.extract_strided_slice %7 {offsets = [0, 128], sizes = [16, 128], strides = [1, 1]} : vector<16x256xf32> to vector<16x128xf32>
    %11 = arith.truncf %10 : vector<16x128xf32> to vector<16x128xbf16>
    %c0_6 = arith.constant 0 : index
    %c0_7 = arith.constant 0 : index
    %12 = vector.load %arg2[%c0_6, %c0_7] : memref<16x1xf32, #tpu.memory_space<vmem>>, vector<16x1xf32>
    %c0_8 = arith.constant 0 : index
    %c0_9 = arith.constant 0 : index
    %13 = vector.load %arg5[%c0_8, %c0_9] : memref<128x128xbf16, #tpu.memory_space<vmem>>, vector<128x128xbf16>
    %cst_10 = arith.constant dense<0.000000e+00> : vector<16x128xf32>
    %14 = tpu.matmul %9, %13, %cst_10 {dimension_numbers = #tpu.dot_dimension_numbers<[1], [0], [0], [1], [0, 0, 1, 1], [], []>} : vector<16x128xbf16>, vector<128x128xbf16>, vector<16x128xf32> -> vector<16x128xf32>
    %c0_11 = arith.constant 0 : index
    %c0_12 = arith.constant 0 : index
    %15 = vector.load %arg6[%c0_11, %c0_12] : memref<1x128xf32, #tpu.memory_space<vmem>>, vector<1x128xf32>
    %16 = vector.broadcast %15 : vector<1x128xf32> to vector<16x128xf32>
    %17 = arith.addf %14, %16 : vector<16x128xf32>
    %18 = vector.broadcast %12 : vector<16x1xf32> to vector<16x128xf32>
    %19 = arith.mulf %17, %18 : vector<16x128xf32>
    %cst_13 = arith.constant 0.000000e+00 : f32
    %20 = vector.broadcast %cst_13 : f32 to vector<16x128xf32>
    %21 = arith.maximumf %19, %20 : vector<16x128xf32>
    %c0_14 = arith.constant 0 : index
    %c0_15 = arith.constant 0 : index
    %22 = vector.load %arg7[%c0_14, %c0_15] : memref<128x128xbf16, #tpu.memory_space<vmem>>, vector<128x128xbf16>
    %cst_16 = arith.constant dense<0.000000e+00> : vector<16x128xf32>
    %23 = tpu.matmul %11, %22, %cst_16 {dimension_numbers = #tpu.dot_dimension_numbers<[1], [0], [0], [1], [0, 0, 1, 1], [], []>} : vector<16x128xbf16>, vector<128x128xbf16>, vector<16x128xf32> -> vector<16x128xf32>
    %c0_17 = arith.constant 0 : index
    %c0_18 = arith.constant 0 : index
    %24 = vector.load %arg8[%c0_17, %c0_18] : memref<1x128xf32, #tpu.memory_space<vmem>>, vector<1x128xf32>
    %25 = vector.broadcast %24 : vector<1x128xf32> to vector<16x128xf32>
    %26 = arith.addf %23, %25 : vector<16x128xf32>
    %27 = vector.broadcast %12 : vector<16x1xf32> to vector<16x128xf32>
    %28 = arith.mulf %26, %27 : vector<16x128xf32>
    %cst_19 = arith.constant 0.000000e+00 : f32
    %29 = vector.broadcast %cst_19 : f32 to vector<16x128xf32>
    %30 = arith.maximumf %28, %29 : vector<16x128xf32>
    %31 = tpu.concatenate %21, %30 in 0 : vector<16x128xf32>, vector<16x128xf32> -> vector<32x128xf32>
    %32 = arith.truncf %31 : vector<32x128xf32> to vector<32x128xbf16>
    %c0_20 = arith.constant 0 : index
    %c0_21 = arith.constant 0 : index
    %33 = vector.load %arg9[%c0_20, %c0_21] : memref<128x128xbf16, #tpu.memory_space<vmem>>, vector<128x128xbf16>
    %cst_22 = arith.constant dense<0.000000e+00> : vector<32x128xf32>
    %34 = tpu.matmul %32, %33, %cst_22 {dimension_numbers = #tpu.dot_dimension_numbers<[1], [0], [0], [1], [0, 0, 1, 1], [], []>} : vector<32x128xbf16>, vector<128x128xbf16>, vector<32x128xf32> -> vector<32x128xf32>
    %c0_23 = arith.constant 0 : index
    %c0_24 = arith.constant 0 : index
    %35 = vector.load %arg10[%c0_23, %c0_24] : memref<1x128xf32, #tpu.memory_space<vmem>>, vector<1x128xf32>
    %36 = vector.broadcast %35 : vector<1x128xf32> to vector<32x128xf32>
    %37 = arith.addf %34, %36 : vector<32x128xf32>
    %cst_25 = arith.constant 0.000000e+00 : f32
    %38 = vector.broadcast %cst_25 : f32 to vector<32x128xf32>
    %39 = arith.maximumf %37, %38 : vector<32x128xf32>
    %40 = vector.extract_strided_slice %39 {offsets = [0, 0], sizes = [16, 128], strides = [1, 1]} : vector<32x128xf32> to vector<16x128xf32>
    %41 = vector.extract_strided_slice %39 {offsets = [16, 0], sizes = [16, 128], strides = [1, 1]} : vector<32x128xf32> to vector<16x128xf32>
    %42 = tpu.concatenate %40, %41 in 1 : vector<16x128xf32>, vector<16x128xf32> -> vector<16x256xf32>
    %43 = arith.truncf %42 : vector<16x256xf32> to vector<16x256xbf16>
    %c0_26 = arith.constant 0 : index
    %c0_27 = arith.constant 0 : index
    %44 = vector.load %arg11[%c0_26, %c0_27] : memref<256x128xbf16, #tpu.memory_space<vmem>>, vector<256x128xbf16>
    %cst_28 = arith.constant dense<0.000000e+00> : vector<16x128xf32>
    %45 = tpu.matmul %43, %44, %cst_28 {dimension_numbers = #tpu.dot_dimension_numbers<[1], [0], [0], [1], [0, 0, 1, 1], [], []>} : vector<16x256xbf16>, vector<256x128xbf16>, vector<16x128xf32> -> vector<16x128xf32>
    %c0_29 = arith.constant 0 : index
    %c0_30 = arith.constant 0 : index
    %46 = vector.load %arg12[%c0_29, %c0_30] : memref<1x128xf32, #tpu.memory_space<vmem>>, vector<1x128xf32>
    %47 = vector.broadcast %46 : vector<1x128xf32> to vector<16x128xf32>
    %48 = arith.addf %45, %47 : vector<16x128xf32>
    %c0_31 = arith.constant 0 : index
    %c0_32 = arith.constant 0 : index
    %49 = vector.load %arg13[%c0_31, %c0_32] : memref<16x128xf32, #tpu.memory_space<vmem>>, vector<16x128xf32>
    tpu.vector_store %arg13[%c0_31, %c0_32], %48 {strides = array<i32>} : memref<16x128xf32, #tpu.memory_space<vmem>>, vector<16x128xf32>,
    return
  }
  func.func @transform_0(%arg0: i32) -> (i32, i32) {
    %c0_i32 = arith.constant 0 : i32
    %c0_i32_0 = arith.constant 0 : i32
    return %arg0, %c0_i32 : i32, i32
  }
  func.func @transform_1(%arg0: i32) -> (i32, i32) {
    %c0_i32 = arith.constant 0 : i32
    %c0_i32_0 = arith.constant 0 : i32
    return %arg0, %c0_i32 : i32, i32
  }
  func.func @transform_2(%arg0: i32) -> (i32, i32) {
    %c0_i32 = arith.constant 0 : i32
    %c0_i32_0 = arith.constant 0 : i32
    %c0_i32_1 = arith.constant 0 : i32
    return %c0_i32, %c0_i32_0 : i32, i32
  }
  func.func @transform_3(%arg0: i32) -> (i32, i32) {
    %c0_i32 = arith.constant 0 : i32
    %c0_i32_0 = arith.constant 0 : i32
    %c0_i32_1 = arith.constant 0 : i32
    return %c0_i32, %c0_i32_0 : i32, i32
  }
  func.func @transform_4(%arg0: i32) -> (i32, i32) {
    %c0_i32 = arith.constant 0 : i32
    %c0_i32_0 = arith.constant 0 : i32
    %c0_i32_1 = arith.constant 0 : i32
    return %c0_i32, %c0_i32_0 : i32, i32
  }
  func.func @transform_5(%arg0: i32) -> (i32, i32) {
    %c0_i32 = arith.constant 0 : i32
    %c0_i32_0 = arith.constant 0 : i32
    %c0_i32_1 = arith.constant 0 : i32
    return %c0_i32, %c0_i32_0 : i32, i32
  }
  func.func @transform_6(%arg0: i32) -> (i32, i32) {
    %c0_i32 = arith.constant 0 : i32
    %c0_i32_0 = arith.constant 0 : i32
    %c0_i32_1 = arith.constant 0 : i32
    return %c0_i32, %c0_i32_0 : i32, i32
  }
  func.func @transform_7(%arg0: i32) -> (i32, i32) {
    %c0_i32 = arith.constant 0 : i32
    %c0_i32_0 = arith.constant 0 : i32
    %c0_i32_1 = arith.constant 0 : i32
    return %c0_i32, %c0_i32_0 : i32, i32
  }
  func.func @transform_8(%arg0: i32) -> (i32, i32) {
    %c0_i32 = arith.constant 0 : i32
    %c0_i32_0 = arith.constant 0 : i32
    %c0_i32_1 = arith.constant 0 : i32
    return %c0_i32, %c0_i32_0 : i32, i32
  }
  func.func @transform_9(%arg0: i32) -> (i32, i32) {
    %c0_i32 = arith.constant 0 : i32
    %c0_i32_0 = arith.constant 0 : i32
    %c0_i32_1 = arith.constant 0 : i32
    return %c0_i32, %c0_i32_0 : i32, i32
  }
  func.func @transform_10(%arg0: i32) -> (i32, i32) {
    %c0_i32 = arith.constant 0 : i32
    %c0_i32_0 = arith.constant 0 : i32
    %c0_i32_1 = arith.constant 0 : i32
    return %c0_i32, %c0_i32_0 : i32, i32
  }
  func.func @transform_11(%arg0: i32) -> (i32, i32) {
    %c0_i32 = arith.constant 0 : i32
    %c0_i32_0 = arith.constant 0 : i32
    %c0_i32_1 = arith.constant 0 : i32
    return %c0_i32, %c0_i32_0 : i32, i32
  }
  func.func @transform_12(%arg0: i32) -> (i32, i32) {
    %c0_i32 = arith.constant 0 : i32
    %c0_i32_0 = arith.constant 0 : i32
    return %arg0, %c0_i32 : i32, i32
  }
}

</mosaic_0001>

<bundles_post_ra>
// kernel: tile.18
= control target key start
LH: loop header
LB: loop body
LE: loop exit
PB: predicated region body
PF: predicated region fallthrough
CT: control target
= control target key end

     0   :  { %s40_s0 = inlined_call_operand.vmem [shape: f32[8], index: 0, kind: input, shape index: {}]   ;;  %s41_s1 = inlined_call_operand.vmem [shape: f32[32,8], index: 1, kind: output, shape index: {}]  }
   0x1   :  { %v4_v0 = vld [vmem:[%s40_s0] ss:$0 sm:$0xff] }
   0x2   :  { %5 = vst [vmem:[%s41_s1] sm:$0xff] %v4_v0  ;;  %12 = vst [vmem:[%s41_s1 + $0x8] sm:$0xff] %v4_v0 }
   0x3   :  { %13 = vst [vmem:[%s41_s1 + $0x10] sm:$0xff] %v4_v0  ;;  %14 = vst [vmem:[%s41_s1 + $0x18] sm:$0xff] %v4_v0 }

// kernel: tile.19
= control target key start
LH: loop header
LB: loop body
LE: loop exit
PB: predicated region body
PF: predicated region fallthrough
CT: control target
= control target key end

     0   :  { %s7_s6 = smov 3  ;;  %s21_s9 = smov 3  ;;  %vm4_vm0 = vcmask 64512   ;;  %vm11_vm1 = vcmask 1048512   ;;  %vm18_vm2 = vcmask 982912   ;;  %vm25_vm3 = vcmask 917312   ;;  %s232_s0 = inlined_call_operand.vmem [shape: f32[32,8], index: 0, kind: input, shape index: {}]   ;;  %s233_s1 = inlined_call_operand.vmem [shape: f32[1,256], index: 1, kind: output, shape index: {}]  }
   0x1   :  { %v122_v0 = vld [vmem:[%s232_s0 + $0xf] ss:$16 sm:%s7_s6]   ;;  %s153_s10 = smov 120   ;;  %v124_v1 = vld [vmem:[%s232_s0 + $0xd] ss:$16 sm:%s21_s9]   ;;  %s14_s13 = smov 3 }
   0x2   :  { %9 = vrot.lane.b32.xlu0 %v122_v0, %s153_s10  ;;  %s154_s14 = smov 104   ;;  %v123_v2 = vld [vmem:[%s232_s0 + $0xe] ss:$16 sm:%s14_s13]   ;;  %s28_s17 = smov 3  ;;  %vm32_vm4 = vcmask 851712   ;;  %vm39_vm5 = vcmask 786112  }
   0x3   :  { %23 = vrot.lane.b32.xlu1 %v124_v1, %s154_s14  ;;  %v125_v3 = vld [vmem:[%s232_s0 + $0xc] ss:$16 sm:%s28_s17]   ;;  %s35_s20 = smov 3  ;;  %s42_s21 = smov 3  ;;  %vm46_vm6 = vcmask 720512   ;;  %vm53_vm7 = vcmask 654912  }
   0x4   :  { %s155_s22 = smov 112   ;;  %s156_s23 = smov 96   ;;  %v126_v4 = vld [vmem:[%s232_s0 + $0xb] ss:$16 sm:%s35_s20]   ;;  %v127_v5 = vld [vmem:[%s232_s0 + $0xa] ss:$16 sm:%s42_s21]  }
   0x5   :  { %s49_s28 = smov 3  ;;  %s56_s29 = smov 3  ;;  %vm60_vm8 = vcmask 589312   ;;  %vm67_vm9 = vcmask 523712   ;;  %vm74_vm10 = vcmask 458112   ;;  %vm81_vm11 = vcmask 392512  }
   0x6   :  { %16 = vrot.lane.b32.xlu0 %v123_v2, %s155_s22  ;;  %s157_s30 = smov 88   ;;  %s158_s2 = smov 80   ;;  %v128_v6 = vld [vmem:[%s232_s0 + $0x9] ss:$16 sm:%s49_s28]   ;;  %vm88_vm12 = vcmask 326912   ;;  %vm95_vm13 = vcmask 261312  }
   0x7   :  { %30 = vrot.lane.b32.xlu1 %v125_v3, %s156_s23  ;;  %v129_v7 = vld [vmem:[%s232_s0 + $0x8] ss:$16 sm:%s56_s29]   ;;  %s63_s7 = smov 3  ;;  %s70_s8 = smov 3  ;;  %vm102_vm14 = vcmask 195712   ;;  %vm109_vm15 = vcmask 130112  }
   0x8   :  { %s159_s9 = smov 72   ;;  %s160_s10 = smov 64   ;;  %v130_v8 = vld [vmem:[%s232_s0 + $0x7] ss:$16 sm:%s63_s7]   ;;  %v131_v9 = vld [vmem:[%s232_s0 + $0x6] ss:$16 sm:%s70_s8]  }
   0x9   :  { %s2_s13 = smov 3  ;;  %s77_s16 = smov 3 }
   0xa   :  { %37 = vrot.lane.b32.xlu0 %v126_v4, %s157_s30  ;;  %v3_v10 = vld [vmem:[%s232_s0] ss:$16 sm:%s2_s13]   ;;  %s84_s19 = smov 3  ;;  %s161_s20 = smov 56  }
   0xb   :  { %44 = vrot.lane.b32.xlu1 %v127_v5, %s158_s2  ;;  %5 = vst.msk [vmem:[#allocation0] ss:$8 sm:$0x3] %vm4_vm0, %v3_v10   ;;  %s162_s21 = smov 48   ;;  %v132_v11 = vld [vmem:[%s232_s0 + $0x5] ss:$16 sm:%s77_s16]  }
   0xc   :  { %v133_v12 = vld [vmem:[%s232_s0 + $0x4] ss:$16 sm:%s84_s19]   ;;  %s91_s26 = smov 3  ;;  %s98_s27 = smov 3 }
   0xd   :  { %s163_s28 = smov 40   ;;  %s164_s29 = smov 32   ;;  %v134_v13 = vld [vmem:[%s232_s0 + $0x3] ss:$16 sm:%s91_s26]   ;;  %v135_v14 = vld [vmem:[%s232_s0 + $0x2] ss:$16 sm:%s98_s27]  }
   0xe   :  { %51 = vrot.lane.b32.xlu0 %v128_v6, %s159_s9  ;;  %s105_s5 = smov 3  ;;  %s165_s6 = smov 24  }
   0xf   :  { %58 = vrot.lane.b32.xlu1 %v129_v7, %s160_s10  ;;  %s166_s7 = smov 16   ;;  %v136_v15 = vld [vmem:[%s232_s0 + $0x1] ss:$16 sm:%s105_s5]   ;;  %s167_s0 = smov 8  }
  0x12   :  { %65 = vrot.lane.b32.xlu0 %v130_v8, %s161_s20 }
  0x13   :  { %72 = vrot.lane.b32.xlu1 %v131_v9, %s162_s21 }
  0x16   :  { %79 = vrot.lane.b32.xlu0 %v132_v11, %s163_s28 }
  0x17   :  { %86 = vrot.lane.b32.xlu1 %v133_v12, %s164_s29 }
  0x1a   :  { %93 = vrot.lane.b32.xlu0 %v134_v13, %s165_s6 }
  0x1b   :  { %100 = vrot.lane.b32.xlu1 %v135_v14, %s166_s7 }
  0x1e   :  { %107 = vrot.lane.b32.xlu0 %v136_v15, %s167_s0 }
  0x74   :  { %v10_v16 = vpop.permute.xlu0 %9  }
  0x75   :  { %12 = vst.msk [vmem:[#allocation0] ss:$8 sm:$0x3] %vm11_vm1, %v10_v16   ;;  %v24_v17 = vpop.permute.xlu1 %23  }
  0x78   :  { %v17_v18 = vpop.permute.xlu0 %16  }
  0x79   :  { %19 = vst.msk [vmem:[#allocation0] ss:$8 sm:$0x3] %vm18_vm2, %v17_v18   ;;  %v31_v19 = vpop.permute.xlu1 %30  }
  0x7a   :  { %26 = vst.msk [vmem:[#allocation0] ss:$8 sm:$0x3] %vm25_vm3, %v24_v17  }
  0x7b   :  { %33 = vst.msk [vmem:[#allocation0] ss:$8 sm:$0x3] %vm32_vm4, %v31_v19  }
  0x7c   :  { %v38_v20 = vpop.permute.xlu0 %37  }
  0x7d   :  { %40 = vst.msk [vmem:[#allocation0] ss:$8 sm:$0x3] %vm39_vm5, %v38_v20   ;;  %v45_v21 = vpop.permute.xlu1 %44  }
  0x7e   :  { %47 = vst.msk [vmem:[#allocation0] ss:$8 sm:$0x3] %vm46_vm6, %v45_v21  }
  0x80   :  { %v52_v22 = vpop.permute.xlu0 %51  }
  0x81   :  { %54 = vst.msk [vmem:[#allocation0] ss:$8 sm:$0x3] %vm53_vm7, %v52_v22   ;;  %v59_v23 = vpop.permute.xlu1 %58  }
  0x82   :  { %61 = vst.msk [vmem:[#allocation0] ss:$8 sm:$0x3] %vm60_vm8, %v59_v23  }
  0x84   :  { %v66_v24 = vpop.permute.xlu0 %65  }
  0x85   :  { %68 = vst.msk [vmem:[#allocation0] ss:$8 sm:$0x3] %vm67_vm9, %v66_v24   ;;  %v73_v25 = vpop.permute.xlu1 %72  }
  0x86   :  { %75 = vst.msk [vmem:[#allocation0] ss:$8 sm:$0x3] %vm74_vm10, %v73_v25  }
  0x88   :  { %v80_v26 = vpop.permute.xlu0 %79  }
  0x89   :  { %82 = vst.msk [vmem:[#allocation0] ss:$8 sm:$0x3] %vm81_vm11, %v80_v26   ;;  %v87_v27 = vpop.permute.xlu1 %86  }
  0x8a   :  { %89 = vst.msk [vmem:[#allocation0] ss:$8 sm:$0x3] %vm88_vm12, %v87_v27  }
  0x8c   :  { %v94_v28 = vpop.permute.xlu0 %93  }
  0x8d   :  { %96 = vst.msk [vmem:[#allocation0] ss:$8 sm:$0x3] %vm95_vm13, %v94_v28   ;;  %v101_v29 = vpop.permute.xlu1 %100  }
  0x8e   :  { %103 = vst.msk [vmem:[#allocation0] ss:$8 sm:$0x3] %vm102_vm14, %v101_v29  }
  0x90   :  { %v108_v30 = vpop.permute.xlu0 %107  }
  0x91   :  { %110 = vst.msk [vmem:[#allocation0] ss:$8 sm:$0x3] %vm109_vm15, %v108_v30  }
  0x98   :  { %v114_v31 = vld [vmem:[#allocation0] sm:$0x1]  ;;  %v118_v32 = vld [vmem:[#allocation0 + $0x8] sm:$0x1] }
  0x99   :  { %116 = vst [vmem:[%s233_s1] sm:$0x1] %v114_v31  ;;  %137 = vst [vmem:[%s233_s1 + $0x1] sm:$0x1] %v118_v32 }

// kernel: tile.28
= control target key start
LH: loop header
LB: loop body
LE: loop exit
PB: predicated region body
PF: predicated region fallthrough
CT: control target
= control target key end

     0   :  { %s28_s0 = inlined_call_operand.vmem [shape: f32[8], index: 0, kind: input, shape index: {}]   ;;  %s29_s1 = inlined_call_operand.vmem [shape: f32[16,8], index: 1, kind: output, shape index: {}]  }
   0x1   :  { %v4_v0 = vld [vmem:[%s28_s0] ss:$0 sm:$0xff] }
   0x2   :  { %5 = vst [vmem:[%s29_s1] sm:$0xff] %v4_v0  ;;  %8 = vst [vmem:[%s29_s1 + $0x8] sm:$0xff] %v4_v0 }

// kernel: tile.29
= control target key start
LH: loop header
LB: loop body
LE: loop exit
PB: predicated region body
PF: predicated region fallthrough
CT: control target
= control target key end

     0   :  { %s131_s10 = smov 120   ;;  %s132_s11 = smov 104   ;;  %vm3_vm0 = vcmask 64512   ;;  %vm9_vm1 = vcmask 1048512   ;;  %vm15_vm2 = vcmask 982912   ;;  %vm21_vm3 = vcmask 917312   ;;  %s207_s0 = inlined_call_operand.vmem [shape: f32[16,8], index: 0, kind: input, shape index: {}]   ;;  %s208_s1 = inlined_call_operand.vmem [shape: f32[1,128], index: 1, kind: output, shape index: {}]  }
   0x1   :  { %v101_v0 = vld [vmem:[%s207_s0 + $0xf] sm:$0x1]   ;;  %v103_v1 = vld [vmem:[%s207_s0 + $0xd] sm:$0x1]   ;;  %v102_v2 = vld [vmem:[%s207_s0 + $0xe] sm:$0x1]  }
   0x2   :  { %7 = vrot.lane.b32.xlu0 %v101_v0, %s131_s10  ;;  %19 = vrot.lane.b32.xlu1 %v103_v1, %s132_s11  ;;  %v104_v3 = vld [vmem:[%s207_s0 + $0xc] sm:$0x1]   ;;  %s133_s16 = smov 112   ;;  %s134_s17 = smov 96   ;;  %v105_v4 = vld [vmem:[%s207_s0 + $0xb] sm:$0x1]  }
   0x3   :  { %v106_v5 = vld [vmem:[%s207_s0 + $0xa] sm:$0x1]   ;;  %v2_v6 = vld [vmem:[%s207_s0] sm:$0x1]   ;;  %s135_s24 = smov 88   ;;  %s136_s25 = smov 80  }
   0x4   :  { %4 = vst.msk [vmem:[#allocation0] sm:$0x1] %vm3_vm0, %v2_v6   ;;  %v107_v7 = vld [vmem:[%s207_s0 + $0x9] sm:$0x1]   ;;  %v108_v8 = vld [vmem:[%s207_s0 + $0x8] sm:$0x1]  }
   0x5   :  { %s137_s30 = smov 72   ;;  %s138_s2 = smov 64   ;;  %v109_v9 = vld [vmem:[%s207_s0 + $0x7] sm:$0x1]   ;;  %v110_v10 = vld [vmem:[%s207_s0 + $0x6] sm:$0x1]  }
   0x6   :  { %13 = vrot.lane.b32.xlu0 %v102_v2, %s133_s16  ;;  %25 = vrot.lane.b32.xlu1 %v104_v3, %s134_s17  ;;  %s139_s7 = smov 56   ;;  %s140_s8 = smov 48   ;;  %v111_v11 = vld [vmem:[%s207_s0 + $0x5] sm:$0x1]   ;;  %v112_v12 = vld [vmem:[%s207_s0 + $0x4] sm:$0x1]  }
   0x7   :  { %s141_s13 = smov 40   ;;  %s142_s14 = smov 32   ;;  %v113_v13 = vld [vmem:[%s207_s0 + $0x3] sm:$0x1]   ;;  %v114_v14 = vld [vmem:[%s207_s0 + $0x2] sm:$0x1]  }
   0x8   :  { %s143_s19 = smov 24   ;;  %s144_s20 = smov 16   ;;  %v115_v15 = vld [vmem:[%s207_s0 + $0x1] sm:$0x1]   ;;  %vm27_vm4 = vcmask 851712   ;;  %vm33_vm5 = vcmask 786112  }
   0x9   :  { %s145_s0 = smov 8   ;;  %vm39_vm6 = vcmask 720512   ;;  %vm45_vm7 = vcmask 654912   ;;  %vm51_vm8 = vcmask 589312   ;;  %vm57_vm9 = vcmask 523712  }
   0xa   :  { %31 = vrot.lane.b32.xlu0 %v105_v4, %s135_s24  ;;  %37 = vrot.lane.b32.xlu1 %v106_v5, %s136_s25  ;;  %vm63_vm10 = vcmask 458112   ;;  %vm69_vm11 = vcmask 392512   ;;  %vm75_vm12 = vcmask 326912   ;;  %vm81_vm13 = vcmask 261312  }
   0xb   :  { %vm87_vm14 = vcmask 195712   ;;  %vm93_vm15 = vcmask 130112  }
   0xe   :  { %43 = vrot.lane.b32.xlu0 %v107_v7, %s137_s30  ;;  %49 = vrot.lane.b32.xlu1 %v108_v8, %s138_s2 }
  0x12   :  { %55 = vrot.lane.b32.xlu0 %v109_v9, %s139_s7  ;;  %61 = vrot.lane.b32.xlu1 %v110_v10, %s140_s8 }
  0x16   :  { %67 = vrot.lane.b32.xlu0 %v111_v11, %s141_s13  ;;  %73 = vrot.lane.b32.xlu1 %v112_v12, %s142_s14 }
  0x1a   :  { %79 = vrot.lane.b32.xlu0 %v113_v13, %s143_s19  ;;  %85 = vrot.lane.b32.xlu1 %v114_v14, %s144_s20 }
  0x1e   :  { %91 = vrot.lane.b32.xlu0 %v115_v15, %s145_s0 }
  0x74   :  { %v8_v16 = vpop.permute.xlu0 %7   ;;  %v20_v17 = vpop.permute.xlu1 %19  }
  0x75   :  { %10 = vst.msk [vmem:[#allocation0] sm:$0x1] %vm9_vm1, %v8_v16  }
  0x78   :  { %v14_v18 = vpop.permute.xlu0 %13   ;;  %v26_v19 = vpop.permute.xlu1 %25  }
  0x79   :  { %16 = vst.msk [vmem:[#allocation0] sm:$0x1] %vm15_vm2, %v14_v18  }
  0x7a   :  { %22 = vst.msk [vmem:[#allocation0] sm:$0x1] %vm21_vm3, %v20_v17  }
  0x7b   :  { %28 = vst.msk [vmem:[#allocation0] sm:$0x1] %vm27_vm4, %v26_v19  }
  0x7c   :  { %v32_v20 = vpop.permute.xlu0 %31   ;;  %v38_v21 = vpop.permute.xlu1 %37  }
  0x7d   :  { %34 = vst.msk [vmem:[#allocation0] sm:$0x1] %vm33_vm5, %v32_v20  }
  0x7e   :  { %40 = vst.msk [vmem:[#allocation0] sm:$0x1] %vm39_vm6, %v38_v21  }
  0x80   :  { %v44_v22 = vpop.permute.xlu0 %43   ;;  %v50_v23 = vpop.permute.xlu1 %49  }
  0x81   :  { %46 = vst.msk [vmem:[#allocation0] sm:$0x1] %vm45_vm7, %v44_v22  }
  0x82   :  { %52 = vst.msk [vmem:[#allocation0] sm:$0x1] %vm51_vm8, %v50_v23  }
  0x84   :  { %v56_v24 = vpop.permute.xlu0 %55   ;;  %v62_v25 = vpop.permute.xlu1 %61  }
  0x85   :  { %58 = vst.msk [vmem:[#allocation0] sm:$0x1] %vm57_vm9, %v56_v24  }
  0x86   :  { %64 = vst.msk [vmem:[#allocation0] sm:$0x1] %vm63_vm10, %v62_v25  }
  0x88   :  { %v68_v26 = vpop.permute.xlu0 %67   ;;  %v74_v27 = vpop.permute.xlu1 %73  }
  0x89   :  { %70 = vst.msk [vmem:[#allocation0] sm:$0x1] %vm69_vm11, %v68_v26  }
  0x8a   :  { %76 = vst.msk [vmem:[#allocation0] sm:$0x1] %vm75_vm12, %v74_v27  }
  0x8c   :  { %v80_v28 = vpop.permute.xlu0 %79   ;;  %v86_v29 = vpop.permute.xlu1 %85  }
  0x8d   :  { %82 = vst.msk [vmem:[#allocation0] sm:$0x1] %vm81_vm13, %v80_v28  }
  0x8e   :  { %88 = vst.msk [vmem:[#allocation0] sm:$0x1] %vm87_vm14, %v86_v29  }
  0x90   :  { %v92_v30 = vpop.permute.xlu0 %91  }
  0x91   :  { %94 = vst.msk [vmem:[#allocation0] sm:$0x1] %vm93_vm15, %v92_v30  }
  0x98   :  { %v98_v31 = vld [vmem:[#allocation0] sm:$0x1] }
  0x99   :  { %100 = vst [vmem:[%s208_s1] sm:$0x1] %v98_v31 }

// kernel: forward.1
= control target key start
LH: loop header
LB: loop body
LE: loop exit
PB: predicated region body
PF: predicated region fallthrough
CT: control target
= control target key end

     0   :  { %s1560_s21 = smov 0   ;;  %s1792_s0 = inlined_call_operand.vmem [shape: bf16[32,128], index: 0, kind: input, shape index: {}]   ;;  %s1793_s1 = inlined_call_operand.vmem [shape: f32[32,1], index: 1, kind: input, shape index: {}]   ;;  %s1794_s2 = inlined_call_operand.vmem [shape: bf16[128,256], index: 2, kind: input, shape index: {}]   ;;  %s1795_s3 = inlined_call_operand.vmem [shape: f32[1,256], index: 3, kind: input, shape index: {}]   ;;  %s1796_s4 = inlined_call_operand.vmem [shape: bf16[128,128], index: 4, kind: input, shape index: {}]   ;;  %s1797_s5 = inlined_call_operand.vmem [shape: f32[1,128], index: 5, kind: input, shape index: {}]   ;;  %s1798_s6 = inlined_call_operand.vmem [shape: bf16[128,128], index: 6, kind: input, shape index: {}]   ;;  %s1799_s7 = inlined_call_operand.vmem [shape: f32[1,128], index: 7, kind: input, shape index: {}]   ;;  %s1800_s8 = inlined_call_operand.vmem [shape: bf16[128,128], index: 8, kind: input, shape index: {}]   ;;  %s1801_s9 = inlined_call_operand.vmem [shape: f32[1,128], index: 9, kind: input, shape index: {}]   ;;  %s1802_s10 = inlined_call_operand.vmem [shape: bf16[256,128], index: 10, kind: input, shape index: {}]   ;;  %s1803_s11 = inlined_call_operand.vmem [shape: f32[1,128], index: 11, kind: input, shape index: {}]   ;;  %s1804_s12 = inlined_call_operand.vmem [shape: f32[32,128], index: 12, kind: output, shape index: {}]  }
   0x1 LB: > { %s1223_s22 = sadd.s32 4294967295, %s1490_s21   ;;  %p1227_p0 = scmp.ge.s32.totalorder %s1490_s21, 1  ;;  %s1490_s21 = sphi %s1560_s21, %s22_s21  }
   0x2   : > { %p374_p1 = scmp.lt.s32.totalorder %s1490_s21, 3 }
   0x4   : > { %p375_p2 = pnand %p1227_p0, %p374_p1 }
   0x5   : > { %v1419_v0 = vld [vmem:[%s1794_s2 + $0x4] ss:$8 sps:$4 sm:$0xff] (!%p375_p2)   ;;  %s1228_s25 = sshll.u32 (!%p375_p2), %s1223_s22, 1  ;;  %v1421_v1 = vld [vmem:[%s1794_s2] ss:$8 sps:$4 sm:$0xff] (!%p375_p2)   ;;  %v1492_v2 = vmov (!%p375_p2), 0   ;;  %v460_v38 = vlaneseq (!%p375_p2) }
   0x6   : > { %378 = sbr.rel (%p375_p2) target bundleno = 923 (0x39b), region = 68  ;;  %588 = vmatprep.mubr.bf16.mxu0 (!%p375_p2), %v1492_v2  ;;  %p422_p3 = scmp.lt.s32.totalorder (!%p375_p2), %s1228_s25, 3  ;;  %1418 = vset.pattern.permute.xlu0 (!%p375_p2), %v1492_v2  ;;  %v1422_v3 = vld [vmem:[%s1794_s2 + $0x14] ss:$8 sps:$4 sm:$0xff] (!%p375_p2)   ;;  %v1493_v4 = vmov (!%p375_p2), 0.0   ;;  %v1444_v11 = vld [vmem:[%s1796_s4] sm:$0xff] (!%p375_p2)  }
   0x7   : > { %556 = vmatprep.subr.bf16.mxu0 (!%p375_p2), %v1419_v0  ;;  %1347 = vmatprep.subr.bf16.mxu1 (!%p375_p2), %v1493_v4  ;;  %v1424_v5 = vld [vmem:[%s1794_s2 + $0x10] ss:$8 sps:$4 sm:$0xff] (!%p375_p2)   ;;  %v1425_v6 = vld [vmem:[%s1794_s2 + $0x24] ss:$8 sps:$4 sm:$0xff] (!%p375_p2)   ;;  %v1427_v7 = vld [vmem:[%s1794_s2 + $0x20] ss:$8 sps:$4 sm:$0xff] (!%p375_p2)  }
   0x8   : > { %557 = vmatpush1.bf16.msra.mxu0 (!%p375_p2), %v1421_v1  ;;  %v1428_v8 = vld [vmem:[%s1794_s2 + $0x34] ss:$8 sps:$4 sm:$0xff] (!%p375_p2)   ;;  %v1430_v9 = vld [vmem:[%s1794_s2 + $0x30] ss:$8 sps:$4 sm:$0xff] (!%p375_p2)   ;;  %v1431_v10 = vld [vmem:[%s1794_s2 + $0x44] ss:$8 sps:$4 sm:$0xff] (!%p375_p2)   ;;  %1348 = vmatpush3.bf16.msra.mxu1 (!%p375_p2), %v1444_v11 }
   0x9   : > { %558 = vmatprep.subr.bf16.mxu0 (!%p375_p2), %v1422_v3  ;;  %v1446_v12 = vld [vmem:[%s1796_s4 + $0x8] sm:$0xff] (!%p375_p2)   ;;  %1349 = vmatprep.subr.bf16.mxu1 (!%p375_p2), %v1493_v4  ;;  %v1434_v14 = vld [vmem:[%s1794_s2 + $0x54] ss:$8 sps:$4 sm:$0xff] (!%p375_p2)   ;;  %v1436_v16 = vld [vmem:[%s1794_s2 + $0x50] ss:$8 sps:$4 sm:$0xff] (!%p375_p2)   ;;  %vm1494_vm0 = vmmov (!%p375_p2), 0  }
   0xa   : > { %v1433_v13 = vld [vmem:[%s1794_s2 + $0x40] ss:$8 sps:$4 sm:$0xff] (!%p375_p2)   ;;  %v1448_v15 = vld [vmem:[%s1796_s4 + $0x10] sm:$0xff] (!%p375_p2)   ;;  %v1437_v17 = vld [vmem:[%s1794_s2 + $0x64] ss:$8 sps:$4 sm:$0xff] (!%p375_p2)   ;;  %1363 = vmatprep.mubr.msk.bf16.mxu1 (!%p375_p2), %vm1494_vm0, %v1493_v4  ;;  %v461_v39 = vshrl.u32 (!%p375_p2), %v460_v38, 7 }
   0xb   : > { %v1450_v18 = vld [vmem:[%s1796_s4 + $0x18] sm:$0xff] (!%p375_p2)   ;;  %v1439_v19 = vld [vmem:[%s1794_s2 + $0x60] ss:$8 sps:$4 sm:$0xff] (!%p375_p2)   ;;  %v1449_v27 = vld [vmem:[%s1798_s6 + $0x10] sm:$0xff] (!%p375_p2)  }
   0xc   : > { %559 = vmatpush1.bf16.msra.mxu0 (!%p375_p2), %v1424_v5  ;;  %1350 = vmatpush3.bf16.msra.mxu1 (!%p375_p2), %v1446_v12  ;;  %v1440_v20 = vld [vmem:[%s1794_s2 + $0x74] ss:$8 sps:$4 sm:$0xff] (!%p375_p2)   ;;  %v1452_v21 = vld [vmem:[%s1796_s4 + $0x20] sm:$0xff] (!%p375_p2)   ;;  %v1442_v22 = vld [vmem:[%s1794_s2 + $0x70] ss:$8 sps:$4 sm:$0xff] (!%p375_p2)   ;;  %v462_v40 = vsub.s32 (!%p375_p2), 0, %v461_v39 }
   0xd   : > { %s1806_s25 = smov (!%p422_p3, %s1228_s25), 3  ;;  %560 = vmatprep.subr.bf16.mxu0 %v1425_v6  ;;  %1351 = vmatprep.subr.bf16.mxu1 %v1493_v4  ;;  %v1454_v24 = vld [vmem:[%s1796_s4 + $0x28] sm:$0xff]   ;;  %v1445_v25 = vld [vmem:[%s1798_s6] sm:$0xff]   ;;  %v1451_v28 = vld [vmem:[%s1798_s6 + $0x18] sm:$0xff]   ;;  %v466_v42 = vsub.s32 1, %v461_v39 }
   0xe   : > { %s1229_s16 = sshll.u32 %s1806_s25, 2  ;;  %v1447_v26 = vld [vmem:[%s1798_s6 + $0x8] sm:$0xff]   ;;  %v1453_v29 = vld [vmem:[%s1798_s6 + $0x20] sm:$0xff]   ;;  %v1456_v31 = vld [vmem:[%s1796_s4 + $0x30] sm:$0xff]  }
   0xf   : > { %s1596_s24 = scalar_lea.vmem %s1792_s0, %s1229_s16  ;;  %v1455_v30 = vld [vmem:[%s1798_s6 + $0x28] sm:$0xff]   ;;  %v1457_v32 = vld [vmem:[%s1798_s6 + $0x30] sm:$0xff]   ;;  %v1458_v33 = vld [vmem:[%s1796_s4 + $0x38] sm:$0xff]  }
  0x10   : > { %561 = vmatpush1.bf16.msra.mxu0 %v1427_v7  ;;  %1352 = vmatpush3.bf16.msra.mxu1 %v1448_v15  ;;  %v1443_v23 = vld [vmem:[%s1596_s24] sm:$0xff]   ;;  %v1459_v34 = vld [vmem:[%s1798_s6 + $0x38] sm:$0xff]   ;;  %s1231_s24 = sshll.u32 %s1806_s25, 3  ;;  %v1461_v58 = vld [vmem:[%s1800_s8 + $0x8] sm:$0xff]  }
  0x11   : > { %562 = vmatprep.subr.bf16.mxu0 %v1428_v8  ;;  %1353 = vmatprep.subr.bf16.mxu1 %v1493_v4  ;;  %v1460_v35 = vld [vmem:[%s1800_s8] sm:$0xff]   ;;  %s431_s16 = scalar_lea.vmem %s1793_s1, %s1231_s24  ;;  %v1462_v60 = vld [vmem:[%s1800_s8 + $0x10] sm:$0xff]   ;;  %v1463_v61 = vld [vmem:[%s1800_s8 + $0x18] sm:$0xff]   ;;  %s437_s15 = scalar_lea.vmem %s1804_s12, %s1231_s24 }
  0x12   : > { %v605_v36 = vld [vmem:[%s431_s16] sm:$0xff]  ;;  %v606_v37 = vld [vmem:[%s431_s16 + $0x8] sm:$0xff]  ;;  %v1466_v0 = vld [vmem:[%s1800_s8 + $0x30] sm:$0xff]  }
  0x13   : > { %721 = vperm.xlu0 %1418, %v605_v36   ;;  %v458_v41 = vld [vmem:[%s1795_s3] sm:$0x3]  ;;  %v1465_v63 = vld [vmem:[%s1800_s8 + $0x28] sm:$0xff]   ;;  %v1467_v1 = vld [vmem:[%s1800_s8 + $0x38] sm:$0xff]  }
  0x14   : > { %563 = vmatpush1.bf16.msra.mxu0 %v1430_v9  ;;  %1354 = vmatpush3.bf16.msra.mxu1 %v1450_v18  ;;  %v463_v43 = vrot.slane %v458_v41, %v462_v40  ;;  %v467_v44 = vrot.slane %v458_v41, %v466_v42  ;;  %v1464_v62 = vld [vmem:[%s1800_s8 + $0x20] sm:$0xff]   ;;  %v1471_v5 = vld [vmem:[%s1802_s10 + $0x8] sm:$0xff]   ;;  %v1472_v6 = vld [vmem:[%s1802_s10 + $0x50] sm:$0xff]  }
  0x15   : > { %564 = vmatprep.subr.bf16.mxu0 %v1431_v10  ;;  %1355 = vmatprep.subr.bf16.mxu1 %v1493_v4  ;;  %v1468_v2 = vld [vmem:[%s1802_s10 + $0x40] sm:$0xff]   ;;  %v1473_v7 = vld [vmem:[%s1802_s10 + $0x10] sm:$0xff]   ;;  %v1474_v8 = vld [vmem:[%s1802_s10 + $0x58] sm:$0xff]  }
  0x16   : > { %v1469_v3 = vld [vmem:[%s1802_s10] sm:$0xff]   ;;  %v1475_v9 = vld [vmem:[%s1802_s10 + $0x18] sm:$0xff]   ;;  %v1478_v12 = vld [vmem:[%s1802_s10 + $0x68] sm:$0xff]  }
  0x17   : > { %726 = vperm.xlu0 %1418, %v606_v37   ;;  %v1476_v10 = vld [vmem:[%s1802_s10 + $0x60] sm:$0xff]   ;;  %v1480_v40 = vld [vmem:[%s1802_s10 + $0x70] sm:$0xff]   ;;  %v1482_v42 = vld [vmem:[%s1802_s10 + $0x78] sm:$0xff]  }
  0x18   : > { %565 = vmatpush1.bf16.msra.mxu0 %v1433_v13  ;;  %1356 = vmatpush3.bf16.msra.mxu1 %v1452_v21  ;;  %v1477_v11 = vld [vmem:[%s1802_s10 + $0x20] sm:$0xff]   ;;  %v1479_v13 = vld [vmem:[%s1802_s10 + $0x28] sm:$0xff]   ;;  %v1481_v41 = vld [vmem:[%s1802_s10 + $0x30] sm:$0xff]  }
  0x19   : > { %566 = vmatprep.subr.bf16.mxu0 %v1434_v14  ;;  %1357 = vmatprep.subr.bf16.mxu1 %v1493_v4  ;;  %v1251_v15 = vld [vmem:[%s1797_s5] ss:$0 sm:$0xff] }
  0x1c   : > { %567 = vmatpush1.bf16.msra.mxu0 %v1436_v16  ;;  %1358 = vmatpush3.bf16.msra.mxu1 %v1454_v24  ;;  %v1260_v16 = vld [vmem:[%s1799_s7] ss:$0 sm:$0xff] }
  0x1d   : > { %568 = vmatprep.subr.bf16.mxu0 %v1437_v17  ;;  %1359 = vmatprep.subr.bf16.mxu1 %v1493_v4 }
  0x20   : > { %569 = vmatpush1.bf16.msra.mxu0 %v1439_v19  ;;  %1360 = vmatpush3.bf16.msra.mxu1 %v1456_v31 }
  0x21   : > { %570 = vmatprep.subr.bf16.mxu0 %v1440_v20  ;;  %1361 = vmatprep.subr.bf16.mxu1 %v1493_v4 }
  0x24   : > { %571 = vmatpush1.bf16.msra.mxu0 %v1442_v22  ;;  %1362 = vmatpush3.bf16.msra.mxu1 %v1458_v33 }
  0x25   : > { %1367 = vmatprep.subr.bf16.mxu0 %v1493_v4  ;;  %1387 = vmatprep.subr.bf16.mxu1 %v1460_v35 }
  0x27   : > { %589 = vmatmul.mubr.bf16.vlgmr.msra.gmra.mrb[0].mxu0 %v1443_v23 }
  0x28   : > { %1368 = vmatpush3.bf16.msra.mxu0 %v1445_v25  ;;  %1383 = vmatprep.mubr.msk.bf16.mxu0 %vm1494_vm0, %v1493_v4 }
  0x29   : > { %1369 = vmatprep.subr.bf16.mxu0 %v1493_v4 }
  0x2c   : > { %1370 = vmatpush3.bf16.msra.mxu0 %v1447_v26 }
  0x2d   : > { %1371 = vmatprep.subr.bf16.mxu0 %v1493_v4 }
  0x30   : > { %1372 = vmatpush3.bf16.msra.mxu0 %v1449_v27 }
  0x31   : > { %1373 = vmatprep.subr.bf16.mxu0 %v1493_v4 }
  0x34   : > { %1374 = vmatpush3.bf16.msra.mxu0 %v1451_v28 }
  0x35   : > { %1375 = vmatprep.subr.bf16.mxu0 %v1493_v4 }
  0x38   : > { %1376 = vmatpush3.bf16.msra.mxu0 %v1453_v29 }
  0x39   : > { %1377 = vmatprep.subr.bf16.mxu0 %v1493_v4 }
  0x3c   : > { %1378 = vmatpush3.bf16.msra.mxu0 %v1455_v30 }
  0x3d   : > { %1379 = vmatprep.subr.bf16.mxu0 %v1493_v4 }
  0x40   : > { %1380 = vmatpush3.bf16.msra.mxu0 %v1457_v32 }
  0x41   : > { %1381 = vmatprep.subr.bf16.mxu0 %v1493_v4  ;;  %v1470_v4 = vld [vmem:[%s1802_s10 + $0x48] sm:$0xff]  }
  0x44   : > { %1382 = vmatpush3.bf16.msra.mxu0 %v1459_v34 }
  0x45   : > { %1325 = vmatprep.subr.bf16.mxu0 %v1468_v2 }
  0x92   : > { %v722_v14 = vpop.permute.xlu0 %721 }
  0x96   : > { %v727_v28 = vpop.permute.xlu0 %726 }
  0xfa   : > { %v590_v45 = vpop.f32.mrb[0].mxu0 }
  0xfb   : > { %v591_v46 = vadd.f32 %v590_v45, %v463_v43  ;;  %v592_v47 = vpop.f32.mrb[1].mxu0 }
  0xfc   : > { %v593_v48 = vadd.f32 %v592_v47, %v467_v44  ;;  %v594_v49 = vpop.f32.mrb[2].mxu0 }
  0xfd   : > { %v595_v50 = vadd.f32 %v594_v49, %v463_v43  ;;  %v596_v51 = vpop.f32.mrb[3].mxu0  ;;  %v599_v53 = vmax.f32 %v591_v46, 0.0  ;;  %v1483_v43 = vld [vmem:[%s1802_s10 + $0x38] sm:$0xff]  }
  0xfe   : > { %v597_v52 = vadd.f32 %v596_v51, %v467_v44  ;;  %v600_v55 = vmax.f32 %v593_v48, 0.0  ;;  %v1269_v44 = vld [vmem:[%s1801_s9] ss:$0 sm:$0xff] }
  0xff   : > { %v601_v54 = vmax.f32 %v595_v50, 0.0 }
 0x100   : > { %v602_v56 = vmax.f32 %v597_v52, 0.0 }
 0x101   : > { %v603_v57 = vpack.c.bf16 %v601_v54, %v599_v53 }
 0x102   : > { %v604_v59 = vpack.c.bf16 %v602_v56, %v600_v55 }
 0x103   : > { %1364 = vmatmul.mubr.bf16.vlgmr.msra.gmra.mrb[0].mxu1 %v603_v57 }
 0x104   : > { %1384 = vmatmul.mubr.bf16.vlgmr.msra.gmra.mrb[4].mxu0 %v604_v59  ;;  %1388 = vmatpush3.bf16.msra.mxu1 %v1460_v35 }
 0x105   : > { %1389 = vmatprep.subr.bf16.mxu1 %v1461_v58  ;;  %1326 = vmatpush3.bf16.msra.mxu0 %v1469_v3 }
 0x106   : > { %1327 = vmatprep.subr.bf16.mxu0 %v1470_v4 }
 0x108   : > { %1390 = vmatpush3.bf16.msra.mxu1 %v1461_v58 }
 0x109   : > { %1391 = vmatprep.subr.bf16.mxu1 %v1462_v60  ;;  %1328 = vmatpush3.bf16.msra.mxu0 %v1471_v5 }
 0x10a   : > { %1329 = vmatprep.subr.bf16.mxu0 %v1472_v6 }
 0x10c   : > { %1392 = vmatpush3.bf16.msra.mxu1 %v1462_v60  ;;  %v1278_v60 = vld [vmem:[%s1803_s11] ss:$0 sm:$0xff] }
 0x10d   : > { %1393 = vmatprep.subr.bf16.mxu1 %v1463_v61  ;;  %1330 = vmatpush3.bf16.msra.mxu0 %v1473_v7 }
 0x10e   : > { %1331 = vmatprep.subr.bf16.mxu0 %v1474_v8 }
 0x110   : > { %1394 = vmatpush3.bf16.msra.mxu1 %v1463_v61 }
 0x111   : > { %1395 = vmatprep.subr.bf16.mxu1 %v1464_v62  ;;  %1332 = vmatpush3.bf16.msra.mxu0 %v1475_v9 }
 0x112   : > { %1333 = vmatprep.subr.bf16.mxu0 %v1476_v10 }
 0x114   : > { %1396 = vmatpush3.bf16.msra.mxu1 %v1464_v62 }
 0x115   : > { %1397 = vmatprep.subr.bf16.mxu1 %v1465_v63  ;;  %1334 = vmatpush3.bf16.msra.mxu0 %v1477_v11 }
 0x116   : > { %1335 = vmatprep.subr.bf16.mxu0 %v1478_v12 }
 0x118   : > { %1398 = vmatpush3.bf16.msra.mxu1 %v1465_v63 }
 0x119   : > { %1399 = vmatprep.subr.bf16.mxu1 %v1466_v0  ;;  %1336 = vmatpush3.bf16.msra.mxu0 %v1479_v13 }
 0x11a   : > { %1337 = vmatprep.subr.bf16.mxu0 %v1480_v40 }
 0x11c   : > { %1400 = vmatpush3.bf16.msra.mxu1 %v1466_v0 }
 0x11d   : > { %1401 = vmatprep.subr.bf16.mxu1 %v1467_v1  ;;  %1338 = vmatpush3.bf16.msra.mxu0 %v1481_v41 }
 0x11e   : > { %1339 = vmatprep.subr.bf16.mxu0 %v1482_v42 }
 0x120   : > { %1402 = vmatpush3.bf16.msra.mxu1 %v1467_v1 }
 0x121   : > { %1340 = vmatpush3.bf16.msra.mxu0 %v1483_v43 }
 0x1d6   : > { %v712_v17 = vpop.f32.mrb[0].mxu1 }
 0x1d7   : > { %v713_v18 = vadd.f32 %v1251_v15, %v712_v17  ;;  %v1365_v19 = vpop.f32.mrb[1].mxu1  ;;  %v838_v20 = vpop.f32.mrb[4].mxu0 }
 0x1d8   : > { %v839_v21 = vadd.f32 %v1260_v16, %v838_v20  ;;  %v715_v22 = vpop.f32.mrb[2].mxu1  ;;  %v1385_v23 = vpop.f32.mrb[5].mxu0 }
 0x1d9   : > { %v729_v24 = vmul.f32 %v722_v14, %v713_v18  ;;  %v716_v25 = vadd.f32 %v1251_v15, %v715_v22  ;;  %v1366_v26 = vpop.f32.mrb[3].mxu1  ;;  %v841_v27 = vpop.f32.mrb[6].mxu0 }
 0x1da   : > { %v845_v29 = vmul.f32 %v839_v21, %v722_v14  ;;  %v842_v30 = vadd.f32 %v1260_v16, %v841_v27  ;;  %v1386_v31 = vpop.f32.mrb[7].mxu0 }
 0x1db   : > { %v730_v32 = vmul.f32 %v727_v28, %v716_v25  ;;  %v731_v34 = vmax.f32 %v729_v24, 0.0 }
 0x1dc   : > { %v846_v33 = vmul.f32 %v842_v30, %v727_v28  ;;  %v847_v36 = vmax.f32 %v845_v29, 0.0 }
 0x1dd   : > { %v732_v35 = vmax.f32 %v730_v32, 0.0 }
 0x1de   : > { %v848_v37 = vmax.f32 %v846_v33, 0.0 }
 0x1df   : > { %v849_v38 = vpack.c.bf16 %v732_v35, %v731_v34 }
 0x1e0   : > { %v850_v39 = vpack.c.bf16 %v848_v37, %v847_v36 }
 0x1e1   : > { %1403 = vmatprep.mubr.bf16.mxu1 %v849_v38 }
 0x1e2   : > { %1404 = vmatmul.mubr.bf16.vlgmr.msra.gmra.mrb[4].mxu1 %v850_v39 }
 0x2b5   : > { %v1405_v45 = vpop.f32.mrb[4].mxu1 }
 0x2b6   : > { %v965_v46 = vadd.f32 %v1405_v45, %v1269_v44  ;;  %v956_v47 = vpop.f32.mrb[5].mxu1 }
 0x2b7   : > { %v957_v48 = vadd.f32 %v1269_v44, %v956_v47  ;;  %v1406_v49 = vpop.f32.mrb[6].mxu1 }
 0x2b8   : > { %v968_v50 = vadd.f32 %v1406_v49, %v1269_v44  ;;  %v959_v51 = vpop.f32.mrb[7].mxu1  ;;  %v973_v53 = vmax.f32 %v965_v46, 0.0 }
 0x2b9   : > { %v960_v52 = vadd.f32 %v1269_v44, %v959_v51  ;;  %v971_v55 = vmax.f32 %v957_v48, 0.0 }
 0x2ba   : > { %v974_v54 = vmax.f32 %v968_v50, 0.0 }
 0x2bb   : > { %v972_v56 = vmax.f32 %v960_v52, 0.0 }
 0x2bc   : > { %v976_v57 = vpack.c.bf16 %v974_v54, %v973_v53 }
 0x2bd   : > { %v975_v58 = vpack.c.bf16 %v972_v56, %v971_v55 }
 0x2be   : > { %1144 = vmatprep.mubr.bf16.mxu0 %v976_v57 }
 0x2bf   : > { %1145 = vmatmul.mubr.bf16.vlgmr.msra.gmra.mrb[8].mxu0 %v975_v58 }
 0x392   : > { %v1341_v59 = vpop.f32.mrb[8].mxu0 }
 0x393   : > { %v1342_v61 = vpop.f32.mrb[9].mxu0 }
 0x394   : > { %v1343_v62 = vadd.f32 %v1342_v61, %v1341_v59  ;;  %v1344_v63 = vpop.f32.mrb[10].mxu0 }
 0x395   : > { %v1345_v0 = vpop.f32.mrb[11].mxu0 }
 0x396   : > { %v1147_v1 = vadd.f32 %v1343_v62, %v1278_v60  ;;  %v1346_v2 = vadd.f32 %v1345_v0, %v1344_v63 }
 0x398   : > { %1153 = vst [vmem:[%s437_s15] sm:$0xff] %v1147_v1  ;;  %v1150_v3 = vadd.f32 %v1346_v2, %v1278_v60 }
 0x39a   : > { %1154 = vst [vmem:[%s437_s15 + $0x8] sm:$0xff] %v1150_v3 }
 0x39b PF: > { %s22_s21 = sadd.s32 1, %s1490_s21  }
 0x39c   : > { %p19_p4 = scmp.ge.s32.totalorder %s22_s21, 4  }
 0x39e   :  { %21 = sbr.rel (!%p19_p4) target bundleno = 1 (0x1), region = 101 }

</bundles_post_ra>
